<compile_context>
chip_gen: v6e
topology: v6e:2x2x1
jax: 0.10.0
libtpu: 0.0.40
codegen_flags: <defaults>
</compile_context>

<pallas_src>
import functools

import jax
import jax.numpy as jnp
from jax.experimental import pallas as pl
from jax.experimental.pallas import tpu as pltpu


# ----------------------------------------------------------------------------
# helpers
# ----------------------------------------------------------------------------
def _round_up(n: int, m: int) -> int:
    return ((n + m - 1) // m) * m


def _vmem_limit_bytes() -> int:
    """Generation-aware VMEM limit: ~3/4 of per-core VMEM
    (96 MiB on v5e/v6e's 128 MiB, 48 MiB on v7x's 64 MiB)."""
    cap = None
    try:
        info = pltpu.get_tpu_info()
        for name in ("vmem_capacity_bytes", "vmem_size_bytes", "vmem_bytes"):
            cap = getattr(info, name, None)
            if cap:
                break
    except Exception:
        cap = None
    if not cap:
        cap = 64 * 1024 * 1024  # conservative fallback (v7x per-core size)
    return int(cap) * 3 // 4


def init_mlp_params(key, input_dim, output_dim, hidden_dims, dtype=jnp.float32):
    """PyTorch nn.Linear-style init: U(-1/sqrt(fan_in), +1/sqrt(fan_in)).
    Weights stored [in_features, out_features]; bias [1, out_features]."""
    dims = [input_dim] + list(hidden_dims) + [output_dim]
    params = []
    for i in range(len(dims) - 1):
        din, dout = dims[i], dims[i + 1]
        key, kw, kb = jax.random.split(key, 3)
        bound = 1.0 / (din ** 0.5)
        w = jax.random.uniform(kw, (din, dout), dtype, -bound, bound)
        b = jax.random.uniform(kb, (1, dout), dtype, -bound, bound)
        params.append((w, b))
    return params


def _prep_kernel_params(q1_params, q2_params, obs_dim, compute_dtype):
    """Flatten both heads' params for the kernel.  Layer-0 weights are split at
    obs_dim so the kernel consumes obs/act without any wrapper-side concat.
    Weights are cast to the compute dtype; biases stay f32 (f32 accumulation)."""
    flat = []
    for params in (q1_params, q2_params):
        w0, b0 = params[0]
        flat.append(jnp.asarray(w0[:obs_dim], compute_dtype))
        flat.append(jnp.asarray(w0[obs_dim:], compute_dtype))
        flat.append(jnp.asarray(b0, jnp.float32))
        for (w, b) in params[1:]:
            flat.append(jnp.asarray(w, compute_dtype))
            flat.append(jnp.asarray(b, jnp.float32))
    return tuple(flat)


def _choose_tiling(batch, obs_dim, act_dim, hidden_dims, compute_dtype,
                   vmem_budget, single_buffered_weights):
    """Pick (tile_b, b_pad).  tile_b is either the whole (8-padded) batch
    (single grid step) or a multiple of 128 (keeps the transposed output block
    lane-dense), sized against the VMEM budget and capped so the grid has
    >= 2 programs (v7x megacore) once the batch reaches 256."""
    itemsize = jnp.dtype(compute_dtype).itemsize
    in_dim = obs_dim + act_dim
    dims = [in_dim] + list(hidden_dims) + [1]
    weight_bytes = 2 * sum(dims[i] * dims[i + 1] * itemsize + dims[i + 1] * 4
                           for i in range(len(dims) - 1))
    if not single_buffered_weights:
        weight_bytes *= 2                       # Pallas double-buffers by default
    max_h = max(dims[1:])
    # VMEM bytes that scale with tile_b: double-buffered obs/act/out tiles plus
    # a generous allowance for live f32 activations of both heads.
    per_row = 2 * in_dim * itemsize + 2 * 8 * 4 + 6 * max_h * 4

    b8 = _round_up(max(batch, 1), 8)
    if b8 < 256:
        return b8, b8                           # single grid step

    avail = max(vmem_budget - weight_bytes, per_row * 128)
    max_rows = max((avail // per_row) // 128 * 128, 128)
    tile_b = min(2048, max_rows)
    half = max(128, (_round_up(batch, 128) // 2) // 128 * 128)
    tile_b = min(tile_b, half)                  # guarantee >= 2 grid programs
    b_pad = _round_up(batch, tile_b)
    return tile_b, b_pad


# ----------------------------------------------------------------------------
# fused double-critic kernel
# ----------------------------------------------------------------------------
def _double_critic_kernel(*refs, n_layers, compute_dtype):
    """refs = (obs, act, <per-head params> x 2, out).
    Per head params: w0_obs, w0_act, b0, then (w, b) for each remaining layer.
    Output tile is (8, tile_b): row 0 = q1, row 1 = q2 (lane-dense store)."""
    obs_ref, act_ref = refs[0], refs[1]
    o_ref = refs[-1]
    param_refs = refs[2:-1]
    per_head = 3 + 2 * (n_layers - 1)

    obs = obs_ref[...]
    act = act_ref[...]
    tile_b = obs.shape[0]

    q_cols = []
    for head in range(2):
        p = param_refs[head * per_head:(head + 1) * per_head]
        # layer 0: split weight so obs / act never get concatenated in HBM
        h = (jnp.dot(obs, p[0][...], preferred_element_type=jnp.float32)
             + jnp.dot(act, p[1][...], preferred_element_type=jnp.float32)
             + p[2][...])
        if n_layers > 1:
            h = jnp.maximum(h, 0.0)
        for li in range(1, n_layers):
            w = p[3 + 2 * (li - 1)][...]
            b = p[4 + 2 * (li - 1)][...]
            h = jnp.dot(h.astype(compute_dtype), w,
                        preferred_element_type=jnp.float32) + b
            if li != n_layers - 1:
                h = jnp.maximum(h, 0.0)
        q_cols.append(h)                                        # (tile_b, 1) f32

    # (tile_b, 8): [q1, q2, 0, ..., 0]; transpose -> (8, tile_b) lane-dense.
    q8 = jnp.concatenate(q_cols + [jnp.zeros((tile_b, 6), jnp.float32)], axis=1)
    o_ref[...] = q8.T.astype(o_ref.dtype)


def _double_critic_forward(obs, act, params_flat, *, tile_b, b_pad, n_layers,
                           compute_dtype, vmem_limit, single_buffer_weights):
    batch, obs_dim = obs.shape
    act_dim = act.shape[1]

    obs_c = obs.astype(compute_dtype)
    act_c = act.astype(compute_dtype)
    if b_pad != batch:
        pad = b_pad - batch
        obs_c = jnp.pad(obs_c, ((0, pad), (0, 0)))
        act_c = jnp.pad(act_c, ((0, pad), (0, 0)))

    grid = (b_pad // tile_b,)

    def const_spec(shape):
        # Weights never change block index; single-buffer them when supported.
        if single_buffer_weights:
            return pl.BlockSpec(shape, lambda i: (0, 0),
                                pipeline_mode=pl.Buffered(1))
        return pl.BlockSpec(shape, lambda i: (0, 0))

    in_specs = [pl.BlockSpec((tile_b, obs_dim), lambda i: (i, 0)),
                pl.BlockSpec((tile_b, act_dim), lambda i: (i, 0))]
    in_specs += [const_spec(p.shape) for p in params_flat]
    out_specs = pl.BlockSpec((8, tile_b), lambda i: (0, i))

    # advisory cost estimate (helps XLA schedule around the custom call)
    per_head = 3 + 2 * (n_layers - 1)
    flops = 0
    bytes_accessed = (obs_c.size * obs_c.dtype.itemsize
                      + act_c.size * act_c.dtype.itemsize
                      + 8 * b_pad * 4)
    for p in params_flat:
        bytes_accessed += p.size * p.dtype.itemsize
    for head in range(2):
        p = params_flat[head * per_head:(head + 1) * per_head]
        flops += 2 * b_pad * (p[0].shape[0] + p[1].shape[0]) * p[0].shape[1]
        for li in range(1, n_layers):
            w = p[3 + 2 * (li - 1)]
            flops += 2 * b_pad * w.shape[0] * w.shape[1]

    kernel = functools.partial(_double_critic_kernel,
                               n_layers=n_layers, compute_dtype=compute_dtype)
    out = pl.pallas_call(
        kernel,
        out_shape=jax.ShapeDtypeStruct((8, b_pad), jnp.float32),
        grid=grid,
        in_specs=in_specs,
        out_specs=out_specs,
        compiler_params=pltpu.CompilerParams(
            dimension_semantics=("parallel",),
            vmem_limit_bytes=int(vmem_limit)),
        cost_estimate=pl.CostEstimate(flops=int(flops), transcendentals=0,
                                      bytes_accessed=int(bytes_accessed)),
    )(obs_c, act_c, *params_flat)

    q1 = out[0, :batch].reshape(batch, 1)
    q2 = out[1, :batch].reshape(batch, 1)
    return q1, q2


# ----------------------------------------------------------------------------
# DoubleCritic wrapper
# ----------------------------------------------------------------------------
class PallasDoubleCritic:
    """JAX/Pallas port of the PyTorch DoubleCritic: two independent MLP Q-heads
    over concat([obs, act], 1), fused into one pallas_call."""

    def __init__(self, key, obs_dim, act_dim, hidden_dims,
                 compute_dtype=jnp.float32):
        self.obs_dim = int(obs_dim)
        self.act_dim = int(act_dim)
        self.hidden_dims = tuple(int(h) for h in hidden_dims)
        self.n_layers = len(self.hidden_dims) + 1
        self.compute_dtype = jnp.dtype(compute_dtype)

        in_dim = self.obs_dim + self.act_dim
        k1, k2 = jax.random.split(key)
        self.q1_params = init_mlp_params(k1, in_dim, 1, self.hidden_dims)
        self.q2_params = init_mlp_params(k2, in_dim, 1, self.hidden_dims)
        self.kernel_params = _prep_kernel_params(
            self.q1_params, self.q2_params, self.obs_dim, self.compute_dtype)

        self._vmem_limit = _vmem_limit_bytes()
        self._chooser_budget = int(self._vmem_limit * 0.8)  # leave Mosaic slack
        self._try_buffered = hasattr(pl, "Buffered")
        self._use_buffered = None

        n_layers = self.n_layers
        cdtype = self.compute_dtype
        vmem_limit = self._vmem_limit

        @functools.partial(jax.jit,
                           static_argnames=("tile_b", "b_pad",
                                            "single_buffer_weights"))
        def _fwd(obs, act, params_flat, *, tile_b, b_pad, single_buffer_weights):
            return _double_critic_forward(
                obs, act, params_flat, tile_b=tile_b, b_pad=b_pad,
                n_layers=n_layers, compute_dtype=cdtype, vmem_limit=vmem_limit,
                single_buffer_weights=single_buffer_weights)

        self._fwd = _fwd

    def __call__(self, obs, act):
        tile_b, b_pad = _choose_tiling(
            obs.shape[0], self.obs_dim, self.act_dim, self.hidden_dims,
            self.compute_dtype, self._chooser_budget,
            single_buffered_weights=bool(self._try_buffered))

        if self._use_buffered is None:
            if self._try_buffered:
                try:
                    q1, q2 = self._fwd(obs, act, self.kernel_params,
                                       tile_b=tile_b, b_pad=b_pad,
                                       single_buffer_weights=True)
                    jax.block_until_ready((q1, q2))
                    self._use_buffered = True
                    return q1, q2
                except Exception:
                    # pipeline_mode / Buffered(1) unsupported -> default buffering
                    self._use_buffered = False
            else:
                self._use_buffered = False

        return self._fwd(obs, act, self.kernel_params,
                         tile_b=tile_b, b_pad=b_pad,
                         single_buffer_weights=bool(self._use_buffered))

    def critic1(self, obs, act):
        return self(obs, act)[0]

    def critic2(self, obs, act):
        return self(obs, act)[1]


# ----------------------------------------------------------------------------
# pure-JAX reference
# ----------------------------------------------------------------------------
def mlp_reference(x, params):
    h = x
    for li, (w, b) in enumerate(params):
        h = h @ w + b
        if li != len(params) - 1:
            h = jnp.maximum(h, 0.0)
    return h


def double_critic_reference(obs, act, q1_params, q2_params):
    x = jnp.concatenate([obs, act], axis=1)
    return mlp_reference(x, q1_params), mlp_reference(x, q2_params)


# ----------------------------------------------------------------------------
# demo / correctness check
# ----------------------------------------------------------------------------
if __name__ == "__main__":
    key = jax.random.PRNGKey(0)

    batch = 4
    obs_dim = 11
    act_dim = 5
    hidden_dims = (32, 32)

    key, kp, ko, ka, kob, kab = jax.random.split(key, 6)
    critic = PallasDoubleCritic(kp, obs_dim, act_dim, hidden_dims)

    obs = jax.random.normal(ko, (batch, obs_dim), jnp.float32)
    act = jax.random.normal(ka, (batch, act_dim), jnp.float32)

    q1, q2 = critic(obs, act)
    jax.block_until_ready((q1, q2))

    q1_ref, q2_ref = double_critic_reference(obs, act,
                                             critic.q1_params, critic.q2_params)
    assert q1.shape == (batch, 1) and q2.shape == (batch, 1)
    assert jnp.allclose(q1, q1_ref, atol=5e-4, rtol=5e-4), "q1 mismatch (small batch)"
    assert jnp.allclose(q2, q2_ref, atol=5e-4, rtol=5e-4), "q2 mismatch (small batch)"

    # Larger batch exercises the multi-program tiled path (grid >= 2, batch pad).
    big = 300
    obs_b = jax.random.normal(kob, (big, obs_dim), jnp.float32)
    act_b = jax.random.normal(kab, (big, act_dim), jnp.float32)
    qb1, qb2 = critic(obs_b, act_b)
    jax.block_until_ready((qb1, qb2))
    qb1_ref, qb2_ref = double_critic_reference(obs_b, act_b,
                                               critic.q1_params, critic.q2_params)
    assert qb1.shape == (big, 1) and qb2.shape == (big, 1)
    assert jnp.allclose(qb1, qb1_ref, atol=5e-4, rtol=5e-4), "q1 mismatch (big batch)"
    assert jnp.allclose(qb2, qb2_ref, atol=5e-4, rtol=5e-4), "q2 mismatch (big batch)"

    # Optional bf16 compute path (f32 accumulation) — loose tolerance check.
    critic_bf16 = PallasDoubleCritic(kp, obs_dim, act_dim, hidden_dims,
                                     compute_dtype=jnp.bfloat16)
    qh1, qh2 = critic_bf16(obs, act)
    jax.block_until_ready((qh1, qh2))
    assert jnp.allclose(qh1, q1_ref, atol=1e-1, rtol=1e-1), "q1 mismatch (bf16)"
    assert jnp.allclose(qh2, q2_ref, atol=1e-1, rtol=1e-1), "q2 mismatch (bf16)"

    print("KERNEL_OK")
</pallas_src>

<mosaic_0001>
module attributes {stable_mosaic.version = 11 : i64} {
  func.func @_double_critic_kernel(%arg0: i32, %arg1: memref<8x11xf32, #tpu.memory_space<vmem>>, %arg2: memref<8x5xf32, #tpu.memory_space<vmem>>, %arg3: memref<11x32xf32, #tpu.memory_space<vmem>>, %arg4: memref<5x32xf32, #tpu.memory_space<vmem>>, %arg5: memref<1x32xf32, #tpu.memory_space<vmem>>, %arg6: memref<32x32xf32, #tpu.memory_space<vmem>>, %arg7: memref<1x32xf32, #tpu.memory_space<vmem>>, %arg8: memref<32x1xf32, #tpu.memory_space<vmem>>, %arg9: memref<1x1xf32, #tpu.memory_space<vmem>>, %arg10: memref<11x32xf32, #tpu.memory_space<vmem>>, %arg11: memref<5x32xf32, #tpu.memory_space<vmem>>, %arg12: memref<1x32xf32, #tpu.memory_space<vmem>>, %arg13: memref<32x32xf32, #tpu.memory_space<vmem>>, %arg14: memref<1x32xf32, #tpu.memory_space<vmem>>, %arg15: memref<32x1xf32, #tpu.memory_space<vmem>>, %arg16: memref<1x1xf32, #tpu.memory_space<vmem>>, %arg17: memref<8x8xf32, #tpu.memory_space<vmem>>) attributes {dimension_semantics = [#tpu.dimension_semantics<parallel>], iteration_bounds = array<i64: 1>, scalar_prefetch = 0 : i64, scratch_operands = 0 : i64, tpu.core_type = #tpu.core_type<tc>, window_params = [{transform_indices = @transform_0, window_bounds = array<i64: 8, 11>}, {transform_indices = @transform_1, window_bounds = array<i64: 8, 5>}, {pipeline_mode = #tpu.pipeline_mode<synchronous>, transform_indices = @transform_2, window_bounds = array<i64: 11, 32>}, {pipeline_mode = #tpu.pipeline_mode<synchronous>, transform_indices = @transform_3, window_bounds = array<i64: 5, 32>}, {pipeline_mode = #tpu.pipeline_mode<synchronous>, transform_indices = @transform_4, window_bounds = array<i64: 1, 32>}, {pipeline_mode = #tpu.pipeline_mode<synchronous>, transform_indices = @transform_5, window_bounds = array<i64: 32, 32>}, {pipeline_mode = #tpu.pipeline_mode<synchronous>, transform_indices = @transform_6, window_bounds = array<i64: 1, 32>}, {pipeline_mode = #tpu.pipeline_mode<synchronous>, transform_indices = @transform_7, window_bounds = array<i64: 32, 1>}, {pipeline_mode = #tpu.pipeline_mode<synchronous>, transform_indices = @transform_8, window_bounds = array<i64: 1, 1>}, {pipeline_mode = #tpu.pipeline_mode<synchronous>, transform_indices = @transform_9, window_bounds = array<i64: 11, 32>}, {pipeline_mode = #tpu.pipeline_mode<synchronous>, transform_indices = @transform_10, window_bounds = array<i64: 5, 32>}, {pipeline_mode = #tpu.pipeline_mode<synchronous>, transform_indices = @transform_11, window_bounds = array<i64: 1, 32>}, {pipeline_mode = #tpu.pipeline_mode<synchronous>, transform_indices = @transform_12, window_bounds = array<i64: 32, 32>}, {pipeline_mode = #tpu.pipeline_mode<synchronous>, transform_indices = @transform_13, window_bounds = array<i64: 1, 32>}, {pipeline_mode = #tpu.pipeline_mode<synchronous>, transform_indices = @transform_14, window_bounds = array<i64: 32, 1>}, {pipeline_mode = #tpu.pipeline_mode<synchronous>, transform_indices = @transform_15, window_bounds = array<i64: 1, 1>}, {transform_indices = @transform_16, window_bounds = array<i64: 8, 8>}]} {
    %c0 = arith.constant 0 : index
    %c0_0 = arith.constant 0 : index
    %0 = vector.load %arg1[%c0, %c0_0] : memref<8x11xf32, #tpu.memory_space<vmem>>, vector<8x11xf32>
    %c0_1 = arith.constant 0 : index
    %c0_2 = arith.constant 0 : index
    %1 = vector.load %arg2[%c0_1, %c0_2] : memref<8x5xf32, #tpu.memory_space<vmem>>, vector<8x5xf32>
    %c0_3 = arith.constant 0 : index
    %c0_4 = arith.constant 0 : index
    %2 = vector.load %arg3[%c0_3, %c0_4] : memref<11x32xf32, #tpu.memory_space<vmem>>, vector<11x32xf32>
    %cst = arith.constant dense<0.000000e+00> : vector<8x32xf32>
    %3 = tpu.matmul %0, %2, %cst {dimension_numbers = #tpu.dot_dimension_numbers<[1], [0], [0], [1], [0, 0, 1, 1], [], []>} : vector<8x11xf32>, vector<11x32xf32>, vector<8x32xf32> -> vector<8x32xf32>
    %c0_5 = arith.constant 0 : index
    %c0_6 = arith.constant 0 : index
    %4 = vector.load %arg4[%c0_5, %c0_6] : memref<5x32xf32, #tpu.memory_space<vmem>>, vector<5x32xf32>
    %cst_7 = arith.constant dense<0.000000e+00> : vector<8x32xf32>
    %5 = tpu.matmul %1, %4, %cst_7 {dimension_numbers = #tpu.dot_dimension_numbers<[1], [0], [0], [1], [0, 0, 1, 1], [], []>} : vector<8x5xf32>, vector<5x32xf32>, vector<8x32xf32> -> vector<8x32xf32>
    %6 = arith.addf %3, %5 : vector<8x32xf32>
    %c0_8 = arith.constant 0 : index
    %c0_9 = arith.constant 0 : index
    %7 = vector.load %arg5[%c0_8, %c0_9] : memref<1x32xf32, #tpu.memory_space<vmem>>, vector<1x32xf32>
    %8 = vector.broadcast %7 : vector<1x32xf32> to vector<8x32xf32>
    %9 = arith.addf %6, %8 : vector<8x32xf32>
    %cst_10 = arith.constant 0.000000e+00 : f32
    %10 = vector.broadcast %cst_10 : f32 to vector<8x32xf32>
    %11 = arith.maximumf %9, %10 : vector<8x32xf32>
    %c0_11 = arith.constant 0 : index
    %c0_12 = arith.constant 0 : index
    %12 = vector.load %arg6[%c0_11, %c0_12] : memref<32x32xf32, #tpu.memory_space<vmem>>, vector<32x32xf32>
    %c0_13 = arith.constant 0 : index
    %c0_14 = arith.constant 0 : index
    %13 = vector.load %arg7[%c0_13, %c0_14] : memref<1x32xf32, #tpu.memory_space<vmem>>, vector<1x32xf32>
    %cst_15 = arith.constant dense<0.000000e+00> : vector<8x32xf32>
    %14 = tpu.matmul %11, %12, %cst_15 {dimension_numbers = #tpu.dot_dimension_numbers<[1], [0], [0], [1], [0, 0, 1, 1], [], []>} : vector<8x32xf32>, vector<32x32xf32>, vector<8x32xf32> -> vector<8x32xf32>
    %15 = vector.broadcast %13 : vector<1x32xf32> to vector<8x32xf32>
    %16 = arith.addf %14, %15 : vector<8x32xf32>
    %cst_16 = arith.constant 0.000000e+00 : f32
    %17 = vector.broadcast %cst_16 : f32 to vector<8x32xf32>
    %18 = arith.maximumf %16, %17 : vector<8x32xf32>
    %c0_17 = arith.constant 0 : index
    %c0_18 = arith.constant 0 : index
    %19 = vector.load %arg8[%c0_17, %c0_18] : memref<32x1xf32, #tpu.memory_space<vmem>>, vector<32x1xf32>
    %c0_19 = arith.constant 0 : index
    %c0_20 = arith.constant 0 : index
    %20 = vector.load %arg9[%c0_19, %c0_20] : memref<1x1xf32, #tpu.memory_space<vmem>>, vector<1x1xf32>
    %cst_21 = arith.constant dense<0.000000e+00> : vector<8x1xf32>
    %21 = tpu.matmul %18, %19, %cst_21 {dimension_numbers = #tpu.dot_dimension_numbers<[1], [0], [0], [1], [0, 0, 1, 1], [], []>} : vector<8x32xf32>, vector<32x1xf32>, vector<8x1xf32> -> vector<8x1xf32>
    %22 = vector.broadcast %20 : vector<1x1xf32> to vector<8x1xf32>
    %23 = arith.addf %21, %22 : vector<8x1xf32>
    %c0_22 = arith.constant 0 : index
    %c0_23 = arith.constant 0 : index
    %24 = vector.load %arg10[%c0_22, %c0_23] : memref<11x32xf32, #tpu.memory_space<vmem>>, vector<11x32xf32>
    %cst_24 = arith.constant dense<0.000000e+00> : vector<8x32xf32>
    %25 = tpu.matmul %0, %24, %cst_24 {dimension_numbers = #tpu.dot_dimension_numbers<[1], [0], [0], [1], [0, 0, 1, 1], [], []>} : vector<8x11xf32>, vector<11x32xf32>, vector<8x32xf32> -> vector<8x32xf32>
    %c0_25 = arith.constant 0 : index
    %c0_26 = arith.constant 0 : index
    %26 = vector.load %arg11[%c0_25, %c0_26] : memref<5x32xf32, #tpu.memory_space<vmem>>, vector<5x32xf32>
    %cst_27 = arith.constant dense<0.000000e+00> : vector<8x32xf32>
    %27 = tpu.matmul %1, %26, %cst_27 {dimension_numbers = #tpu.dot_dimension_numbers<[1], [0], [0], [1], [0, 0, 1, 1], [], []>} : vector<8x5xf32>, vector<5x32xf32>, vector<8x32xf32> -> vector<8x32xf32>
    %28 = arith.addf %25, %27 : vector<8x32xf32>
    %c0_28 = arith.constant 0 : index
    %c0_29 = arith.constant 0 : index
    %29 = vector.load %arg12[%c0_28, %c0_29] : memref<1x32xf32, #tpu.memory_space<vmem>>, vector<1x32xf32>
    %30 = vector.broadcast %29 : vector<1x32xf32> to vector<8x32xf32>
    %31 = arith.addf %28, %30 : vector<8x32xf32>
    %cst_30 = arith.constant 0.000000e+00 : f32
    %32 = vector.broadcast %cst_30 : f32 to vector<8x32xf32>
    %33 = arith.maximumf %31, %32 : vector<8x32xf32>
    %c0_31 = arith.constant 0 : index
    %c0_32 = arith.constant 0 : index
    %34 = vector.load %arg13[%c0_31, %c0_32] : memref<32x32xf32, #tpu.memory_space<vmem>>, vector<32x32xf32>
    %c0_33 = arith.constant 0 : index
    %c0_34 = arith.constant 0 : index
    %35 = vector.load %arg14[%c0_33, %c0_34] : memref<1x32xf32, #tpu.memory_space<vmem>>, vector<1x32xf32>
    %cst_35 = arith.constant dense<0.000000e+00> : vector<8x32xf32>
    %36 = tpu.matmul %33, %34, %cst_35 {dimension_numbers = #tpu.dot_dimension_numbers<[1], [0], [0], [1], [0, 0, 1, 1], [], []>} : vector<8x32xf32>, vector<32x32xf32>, vector<8x32xf32> -> vector<8x32xf32>
    %37 = vector.broadcast %35 : vector<1x32xf32> to vector<8x32xf32>
    %38 = arith.addf %36, %37 : vector<8x32xf32>
    %cst_36 = arith.constant 0.000000e+00 : f32
    %39 = vector.broadcast %cst_36 : f32 to vector<8x32xf32>
    %40 = arith.maximumf %38, %39 : vector<8x32xf32>
    %c0_37 = arith.constant 0 : index
    %c0_38 = arith.constant 0 : index
    %41 = vector.load %arg15[%c0_37, %c0_38] : memref<32x1xf32, #tpu.memory_space<vmem>>, vector<32x1xf32>
    %c0_39 = arith.constant 0 : index
    %c0_40 = arith.constant 0 : index
    %42 = vector.load %arg16[%c0_39, %c0_40] : memref<1x1xf32, #tpu.memory_space<vmem>>, vector<1x1xf32>
    %cst_41 = arith.constant dense<0.000000e+00> : vector<8x1xf32>
    %43 = tpu.matmul %40, %41, %cst_41 {dimension_numbers = #tpu.dot_dimension_numbers<[1], [0], [0], [1], [0, 0, 1, 1], [], []>} : vector<8x32xf32>, vector<32x1xf32>, vector<8x1xf32> -> vector<8x1xf32>
    %44 = vector.broadcast %42 : vector<1x1xf32> to vector<8x1xf32>
    %45 = arith.addf %43, %44 : vector<8x1xf32>
    %cst_42 = arith.constant 0.000000e+00 : f32
    %46 = vector.broadcast %cst_42 : f32 to vector<8x6xf32>
    %47 = tpu.concatenate %23, %45, %46 in 1 : vector<8x1xf32>, vector<8x1xf32>, vector<8x6xf32> -> vector<8x8xf32>
    %48 = tpu.transpose %47, [1, 0] : vector<8x8xf32> -> vector<8x8xf32>
    %c0_43 = arith.constant 0 : index
    %c0_44 = arith.constant 0 : index
    %49 = vector.load %arg17[%c0_43, %c0_44] : memref<8x8xf32, #tpu.memory_space<vmem>>, vector<8x8xf32>
    tpu.vector_store %arg17[%c0_43, %c0_44], %48 {strides = array<i32>} : memref<8x8xf32, #tpu.memory_space<vmem>>, vector<8x8xf32>,
    return
  }
  func.func @transform_0(%arg0: i32) -> (i32, i32) {
    %c0_i32 = arith.constant 0 : i32
    %c0_i32_0 = arith.constant 0 : i32
    return %arg0, %c0_i32 : i32, i32
  }
  func.func @transform_1(%arg0: i32) -> (i32, i32) {
    %c0_i32 = arith.constant 0 : i32
    %c0_i32_0 = arith.constant 0 : i32
    return %arg0, %c0_i32 : i32, i32
  }
  func.func @transform_2(%arg0: i32) -> (i32, i32) {
    %c0_i32 = arith.constant 0 : i32
    %c0_i32_0 = arith.constant 0 : i32
    %c0_i32_1 = arith.constant 0 : i32
    return %c0_i32, %c0_i32_0 : i32, i32
  }
  func.func @transform_3(%arg0: i32) -> (i32, i32) {
    %c0_i32 = arith.constant 0 : i32
    %c0_i32_0 = arith.constant 0 : i32
    %c0_i32_1 = arith.constant 0 : i32
    return %c0_i32, %c0_i32_0 : i32, i32
  }
  func.func @transform_4(%arg0: i32) -> (i32, i32) {
    %c0_i32 = arith.constant 0 : i32
    %c0_i32_0 = arith.constant 0 : i32
    %c0_i32_1 = arith.constant 0 : i32
    return %c0_i32, %c0_i32_0 : i32, i32
  }
  func.func @transform_5(%arg0: i32) -> (i32, i32) {
    %c0_i32 = arith.constant 0 : i32
    %c0_i32_0 = arith.constant 0 : i32
    %c0_i32_1 = arith.constant 0 : i32
    return %c0_i32, %c0_i32_0 : i32, i32
  }
  func.func @transform_6(%arg0: i32) -> (i32, i32) {
    %c0_i32 = arith.constant 0 : i32
    %c0_i32_0 = arith.constant 0 : i32
    %c0_i32_1 = arith.constant 0 : i32
    return %c0_i32, %c0_i32_0 : i32, i32
  }
  func.func @transform_7(%arg0: i32) -> (i32, i32) {
    %c0_i32 = arith.constant 0 : i32
    %c0_i32_0 = arith.constant 0 : i32
    %c0_i32_1 = arith.constant 0 : i32
    return %c0_i32, %c0_i32_0 : i32, i32
  }
  func.func @transform_8(%arg0: i32) -> (i32, i32) {
    %c0_i32 = arith.constant 0 : i32
    %c0_i32_0 = arith.constant 0 : i32
    %c0_i32_1 = arith.constant 0 : i32
    return %c0_i32, %c0_i32_0 : i32, i32
  }
  func.func @transform_9(%arg0: i32) -> (i32, i32) {
    %c0_i32 = arith.constant 0 : i32
    %c0_i32_0 = arith.constant 0 : i32
    %c0_i32_1 = arith.constant 0 : i32
    return %c0_i32, %c0_i32_0 : i32, i32
  }
  func.func @transform_10(%arg0: i32) -> (i32, i32) {
    %c0_i32 = arith.constant 0 : i32
    %c0_i32_0 = arith.constant 0 : i32
    %c0_i32_1 = arith.constant 0 : i32
    return %c0_i32, %c0_i32_0 : i32, i32
  }
  func.func @transform_11(%arg0: i32) -> (i32, i32) {
    %c0_i32 = arith.constant 0 : i32
    %c0_i32_0 = arith.constant 0 : i32
    %c0_i32_1 = arith.constant 0 : i32
    return %c0_i32, %c0_i32_0 : i32, i32
  }
  func.func @transform_12(%arg0: i32) -> (i32, i32) {
    %c0_i32 = arith.constant 0 : i32
    %c0_i32_0 = arith.constant 0 : i32
    %c0_i32_1 = arith.constant 0 : i32
    return %c0_i32, %c0_i32_0 : i32, i32
  }
  func.func @transform_13(%arg0: i32) -> (i32, i32) {
    %c0_i32 = arith.constant 0 : i32
    %c0_i32_0 = arith.constant 0 : i32
    %c0_i32_1 = arith.constant 0 : i32
    return %c0_i32, %c0_i32_0 : i32, i32
  }
  func.func @transform_14(%arg0: i32) -> (i32, i32) {
    %c0_i32 = arith.constant 0 : i32
    %c0_i32_0 = arith.constant 0 : i32
    %c0_i32_1 = arith.constant 0 : i32
    return %c0_i32, %c0_i32_0 : i32, i32
  }
  func.func @transform_15(%arg0: i32) -> (i32, i32) {
    %c0_i32 = arith.constant 0 : i32
    %c0_i32_0 = arith.constant 0 : i32
    %c0_i32_1 = arith.constant 0 : i32
    return %c0_i32, %c0_i32_0 : i32, i32
  }
  func.func @transform_16(%arg0: i32) -> (i32, i32) {
    %c0_i32 = arith.constant 0 : i32
    %c0_i32_0 = arith.constant 0 : i32
    return %c0_i32, %arg0 : i32, i32
  }
}

module attributes {stable_mosaic.version = 11 : i64} {
  func.func @_double_critic_kernel(%arg0: i32, %arg1: memref<8x11xf32, #tpu.memory_space<vmem>>, %arg2: memref<8x5xf32, #tpu.memory_space<vmem>>, %arg3: memref<11x32xf32, #tpu.memory_space<vmem>>, %arg4: memref<5x32xf32, #tpu.memory_space<vmem>>, %arg5: memref<1x32xf32, #tpu.memory_space<vmem>>, %arg6: memref<32x32xf32, #tpu.memory_space<vmem>>, %arg7: memref<1x32xf32, #tpu.memory_space<vmem>>, %arg8: memref<32x1xf32, #tpu.memory_space<vmem>>, %arg9: memref<1x1xf32, #tpu.memory_space<vmem>>, %arg10: memref<11x32xf32, #tpu.memory_space<vmem>>, %arg11: memref<5x32xf32, #tpu.memory_space<vmem>>, %arg12: memref<1x32xf32, #tpu.memory_space<vmem>>, %arg13: memref<32x32xf32, #tpu.memory_space<vmem>>, %arg14: memref<1x32xf32, #tpu.memory_space<vmem>>, %arg15: memref<32x1xf32, #tpu.memory_space<vmem>>, %arg16: memref<1x1xf32, #tpu.memory_space<vmem>>, %arg17: memref<8x8xf32, #tpu.memory_space<vmem>>) attributes {dimension_semantics = [#tpu.dimension_semantics<parallel>], iteration_bounds = array<i64: 1>, scalar_prefetch = 0 : i64, scratch_operands = 0 : i64, tpu.core_type = #tpu.core_type<tc>, window_params = [{transform_indices = @transform_0, window_bounds = array<i64: 8, 11>}, {transform_indices = @transform_1, window_bounds = array<i64: 8, 5>}, {pipeline_mode = #tpu.pipeline_mode<synchronous>, transform_indices = @transform_2, window_bounds = array<i64: 11, 32>}, {pipeline_mode = #tpu.pipeline_mode<synchronous>, transform_indices = @transform_3, window_bounds = array<i64: 5, 32>}, {pipeline_mode = #tpu.pipeline_mode<synchronous>, transform_indices = @transform_4, window_bounds = array<i64: 1, 32>}, {pipeline_mode = #tpu.pipeline_mode<synchronous>, transform_indices = @transform_5, window_bounds = array<i64: 32, 32>}, {pipeline_mode = #tpu.pipeline_mode<synchronous>, transform_indices = @transform_6, window_bounds = array<i64: 1, 32>}, {pipeline_mode = #tpu.pipeline_mode<synchronous>, transform_indices = @transform_7, window_bounds = array<i64: 32, 1>}, {pipeline_mode = #tpu.pipeline_mode<synchronous>, transform_indices = @transform_8, window_bounds = array<i64: 1, 1>}, {pipeline_mode = #tpu.pipeline_mode<synchronous>, transform_indices = @transform_9, window_bounds = array<i64: 11, 32>}, {pipeline_mode = #tpu.pipeline_mode<synchronous>, transform_indices = @transform_10, window_bounds = array<i64: 5, 32>}, {pipeline_mode = #tpu.pipeline_mode<synchronous>, transform_indices = @transform_11, window_bounds = array<i64: 1, 32>}, {pipeline_mode = #tpu.pipeline_mode<synchronous>, transform_indices = @transform_12, window_bounds = array<i64: 32, 32>}, {pipeline_mode = #tpu.pipeline_mode<synchronous>, transform_indices = @transform_13, window_bounds = array<i64: 1, 32>}, {pipeline_mode = #tpu.pipeline_mode<synchronous>, transform_indices = @transform_14, window_bounds = array<i64: 32, 1>}, {pipeline_mode = #tpu.pipeline_mode<synchronous>, transform_indices = @transform_15, window_bounds = array<i64: 1, 1>}, {transform_indices = @transform_16, window_bounds = array<i64: 8, 8>}]} {
    %c0 = arith.constant 0 : index
    %c0_0 = arith.constant 0 : index
    %0 = vector.load %arg1[%c0, %c0_0] : memref<8x11xf32, #tpu.memory_space<vmem>>, vector<8x11xf32>
    %c0_1 = arith.constant 0 : index
    %c0_2 = arith.constant 0 : index
    %1 = vector.load %arg2[%c0_1, %c0_2] : memref<8x5xf32, #tpu.memory_space<vmem>>, vector<8x5xf32>
    %c0_3 = arith.constant 0 : index
    %c0_4 = arith.constant 0 : index
    %2 = vector.load %arg3[%c0_3, %c0_4] : memref<11x32xf32, #tpu.memory_space<vmem>>, vector<11x32xf32>
    %cst = arith.constant dense<0.000000e+00> : vector<8x32xf32>
    %3 = tpu.matmul %0, %2, %cst {dimension_numbers = #tpu.dot_dimension_numbers<[1], [0], [0], [1], [0, 0, 1, 1], [], []>} : vector<8x11xf32>, vector<11x32xf32>, vector<8x32xf32> -> vector<8x32xf32>
    %c0_5 = arith.constant 0 : index
    %c0_6 = arith.constant 0 : index
    %4 = vector.load %arg4[%c0_5, %c0_6] : memref<5x32xf32, #tpu.memory_space<vmem>>, vector<5x32xf32>
    %cst_7 = arith.constant dense<0.000000e+00> : vector<8x32xf32>
    %5 = tpu.matmul %1, %4, %cst_7 {dimension_numbers = #tpu.dot_dimension_numbers<[1], [0], [0], [1], [0, 0, 1, 1], [], []>} : vector<8x5xf32>, vector<5x32xf32>, vector<8x32xf32> -> vector<8x32xf32>
    %6 = arith.addf %3, %5 : vector<8x32xf32>
    %c0_8 = arith.constant 0 : index
    %c0_9 = arith.constant 0 : index
    %7 = vector.load %arg5[%c0_8, %c0_9] : memref<1x32xf32, #tpu.memory_space<vmem>>, vector<1x32xf32>
    %8 = vector.broadcast %7 : vector<1x32xf32> to vector<8x32xf32>
    %9 = arith.addf %6, %8 : vector<8x32xf32>
    %cst_10 = arith.constant 0.000000e+00 : f32
    %10 = vector.broadcast %cst_10 : f32 to vector<8x32xf32>
    %11 = arith.maximumf %9, %10 : vector<8x32xf32>
    %c0_11 = arith.constant 0 : index
    %c0_12 = arith.constant 0 : index
    %12 = vector.load %arg6[%c0_11, %c0_12] : memref<32x32xf32, #tpu.memory_space<vmem>>, vector<32x32xf32>
    %c0_13 = arith.constant 0 : index
    %c0_14 = arith.constant 0 : index
    %13 = vector.load %arg7[%c0_13, %c0_14] : memref<1x32xf32, #tpu.memory_space<vmem>>, vector<1x32xf32>
    %cst_15 = arith.constant dense<0.000000e+00> : vector<8x32xf32>
    %14 = tpu.matmul %11, %12, %cst_15 {dimension_numbers = #tpu.dot_dimension_numbers<[1], [0], [0], [1], [0, 0, 1, 1], [], []>} : vector<8x32xf32>, vector<32x32xf32>, vector<8x32xf32> -> vector<8x32xf32>
    %15 = vector.broadcast %13 : vector<1x32xf32> to vector<8x32xf32>
    %16 = arith.addf %14, %15 : vector<8x32xf32>
    %cst_16 = arith.constant 0.000000e+00 : f32
    %17 = vector.broadcast %cst_16 : f32 to vector<8x32xf32>
    %18 = arith.maximumf %16, %17 : vector<8x32xf32>
    %c0_17 = arith.constant 0 : index
    %c0_18 = arith.constant 0 : index
    %19 = vector.load %arg8[%c0_17, %c0_18] : memref<32x1xf32, #tpu.memory_space<vmem>>, vector<32x1xf32>
    %c0_19 = arith.constant 0 : index
    %c0_20 = arith.constant 0 : index
    %20 = vector.load %arg9[%c0_19, %c0_20] : memref<1x1xf32, #tpu.memory_space<vmem>>, vector<1x1xf32>
    %cst_21 = arith.constant dense<0.000000e+00> : vector<8x1xf32>
    %21 = tpu.matmul %18, %19, %cst_21 {dimension_numbers = #tpu.dot_dimension_numbers<[1], [0], [0], [1], [0, 0, 1, 1], [], []>} : vector<8x32xf32>, vector<32x1xf32>, vector<8x1xf32> -> vector<8x1xf32>
    %22 = vector.broadcast %20 : vector<1x1xf32> to vector<8x1xf32>
    %23 = arith.addf %21, %22 : vector<8x1xf32>
    %c0_22 = arith.constant 0 : index
    %c0_23 = arith.constant 0 : index
    %24 = vector.load %arg10[%c0_22, %c0_23] : memref<11x32xf32, #tpu.memory_space<vmem>>, vector<11x32xf32>
    %cst_24 = arith.constant dense<0.000000e+00> : vector<8x32xf32>
    %25 = tpu.matmul %0, %24, %cst_24 {dimension_numbers = #tpu.dot_dimension_numbers<[1], [0], [0], [1], [0, 0, 1, 1], [], []>} : vector<8x11xf32>, vector<11x32xf32>, vector<8x32xf32> -> vector<8x32xf32>
    %c0_25 = arith.constant 0 : index
    %c0_26 = arith.constant 0 : index
    %26 = vector.load %arg11[%c0_25, %c0_26] : memref<5x32xf32, #tpu.memory_space<vmem>>, vector<5x32xf32>
    %cst_27 = arith.constant dense<0.000000e+00> : vector<8x32xf32>
    %27 = tpu.matmul %1, %26, %cst_27 {dimension_numbers = #tpu.dot_dimension_numbers<[1], [0], [0], [1], [0, 0, 1, 1], [], []>} : vector<8x5xf32>, vector<5x32xf32>, vector<8x32xf32> -> vector<8x32xf32>
    %28 = arith.addf %25, %27 : vector<8x32xf32>
    %c0_28 = arith.constant 0 : index
    %c0_29 = arith.constant 0 : index
    %29 = vector.load %arg12[%c0_28, %c0_29] : memref<1x32xf32, #tpu.memory_space<vmem>>, vector<1x32xf32>
    %30 = vector.broadcast %29 : vector<1x32xf32> to vector<8x32xf32>
    %31 = arith.addf %28, %30 : vector<8x32xf32>
    %cst_30 = arith.constant 0.000000e+00 : f32
    %32 = vector.broadcast %cst_30 : f32 to vector<8x32xf32>
    %33 = arith.maximumf %31, %32 : vector<8x32xf32>
    %c0_31 = arith.constant 0 : index
    %c0_32 = arith.constant 0 : index
    %34 = vector.load %arg13[%c0_31, %c0_32] : memref<32x32xf32, #tpu.memory_space<vmem>>, vector<32x32xf32>
    %c0_33 = arith.constant 0 : index
    %c0_34 = arith.constant 0 : index
    %35 = vector.load %arg14[%c0_33, %c0_34] : memref<1x32xf32, #tpu.memory_space<vmem>>, vector<1x32xf32>
    %cst_35 = arith.constant dense<0.000000e+00> : vector<8x32xf32>
    %36 = tpu.matmul %33, %34, %cst_35 {dimension_numbers = #tpu.dot_dimension_numbers<[1], [0], [0], [1], [0, 0, 1, 1], [], []>} : vector<8x32xf32>, vector<32x32xf32>, vector<8x32xf32> -> vector<8x32xf32>
    %37 = vector.broadcast %35 : vector<1x32xf32> to vector<8x32xf32>
    %38 = arith.addf %36, %37 : vector<8x32xf32>
    %cst_36 = arith.constant 0.000000e+00 : f32
    %39 = vector.broadcast %cst_36 : f32 to vector<8x32xf32>
    %40 = arith.maximumf %38, %39 : vector<8x32xf32>
    %c0_37 = arith.constant 0 : index
    %c0_38 = arith.constant 0 : index
    %41 = vector.load %arg15[%c0_37, %c0_38] : memref<32x1xf32, #tpu.memory_space<vmem>>, vector<32x1xf32>
    %c0_39 = arith.constant 0 : index
    %c0_40 = arith.constant 0 : index
    %42 = vector.load %arg16[%c0_39, %c0_40] : memref<1x1xf32, #tpu.memory_space<vmem>>, vector<1x1xf32>
    %cst_41 = arith.constant dense<0.000000e+00> : vector<8x1xf32>
    %43 = tpu.matmul %40, %41, %cst_41 {dimension_numbers = #tpu.dot_dimension_numbers<[1], [0], [0], [1], [0, 0, 1, 1], [], []>} : vector<8x32xf32>, vector<32x1xf32>, vector<8x1xf32> -> vector<8x1xf32>
    %44 = vector.broadcast %42 : vector<1x1xf32> to vector<8x1xf32>
    %45 = arith.addf %43, %44 : vector<8x1xf32>
    %cst_42 = arith.constant 0.000000e+00 : f32
    %46 = vector.broadcast %cst_42 : f32 to vector<8x6xf32>
    %47 = tpu.concatenate %23, %45, %46 in 1 : vector<8x1xf32>, vector<8x1xf32>, vector<8x6xf32> -> vector<8x8xf32>
    %48 = tpu.transpose %47, [1, 0] : vector<8x8xf32> -> vector<8x8xf32>
    %c0_43 = arith.constant 0 : index
    %c0_44 = arith.constant 0 : index
    %49 = vector.load %arg17[%c0_43, %c0_44] : memref<8x8xf32, #tpu.memory_space<vmem>>, vector<8x8xf32>
    tpu.vector_store %arg17[%c0_43, %c0_44], %48 {strides = array<i32>} : memref<8x8xf32, #tpu.memory_space<vmem>>, vector<8x8xf32>,
    return
  }
  func.func @transform_0(%arg0: i32) -> (i32, i32) {
    %c0_i32 = arith.constant 0 : i32
    %c0_i32_0 = arith.constant 0 : i32
    return %arg0, %c0_i32 : i32, i32
  }
  func.func @transform_1(%arg0: i32) -> (i32, i32) {
    %c0_i32 = arith.constant 0 : i32
    %c0_i32_0 = arith.constant 0 : i32
    return %arg0, %c0_i32 : i32, i32
  }
  func.func @transform_2(%arg0: i32) -> (i32, i32) {
    %c0_i32 = arith.constant 0 : i32
    %c0_i32_0 = arith.constant 0 : i32
    %c0_i32_1 = arith.constant 0 : i32
    return %c0_i32, %c0_i32_0 : i32, i32
  }
  func.func @transform_3(%arg0: i32) -> (i32, i32) {
    %c0_i32 = arith.constant 0 : i32
    %c0_i32_0 = arith.constant 0 : i32
    %c0_i32_1 = arith.constant 0 : i32
    return %c0_i32, %c0_i32_0 : i32, i32
  }
  func.func @transform_4(%arg0: i32) -> (i32, i32) {
    %c0_i32 = arith.constant 0 : i32
    %c0_i32_0 = arith.constant 0 : i32
    %c0_i32_1 = arith.constant 0 : i32
    return %c0_i32, %c0_i32_0 : i32, i32
  }
  func.func @transform_5(%arg0: i32) -> (i32, i32) {
    %c0_i32 = arith.constant 0 : i32
    %c0_i32_0 = arith.constant 0 : i32
    %c0_i32_1 = arith.constant 0 : i32
    return %c0_i32, %c0_i32_0 : i32, i32
  }
  func.func @transform_6(%arg0: i32) -> (i32, i32) {
    %c0_i32 = arith.constant 0 : i32
    %c0_i32_0 = arith.constant 0 : i32
    %c0_i32_1 = arith.constant 0 : i32
    return %c0_i32, %c0_i32_0 : i32, i32
  }
  func.func @transform_7(%arg0: i32) -> (i32, i32) {
    %c0_i32 = arith.constant 0 : i32
    %c0_i32_0 = arith.constant 0 : i32
    %c0_i32_1 = arith.constant 0 : i32
    return %c0_i32, %c0_i32_0 : i32, i32
  }
  func.func @transform_8(%arg0: i32) -> (i32, i32) {
    %c0_i32 = arith.constant 0 : i32
    %c0_i32_0 = arith.constant 0 : i32
    %c0_i32_1 = arith.constant 0 : i32
    return %c0_i32, %c0_i32_0 : i32, i32
  }
  func.func @transform_9(%arg0: i32) -> (i32, i32) {
    %c0_i32 = arith.constant 0 : i32
    %c0_i32_0 = arith.constant 0 : i32
    %c0_i32_1 = arith.constant 0 : i32
    return %c0_i32, %c0_i32_0 : i32, i32
  }
  func.func @transform_10(%arg0: i32) -> (i32, i32) {
    %c0_i32 = arith.constant 0 : i32
    %c0_i32_0 = arith.constant 0 : i32
    %c0_i32_1 = arith.constant 0 : i32
    return %c0_i32, %c0_i32_0 : i32, i32
  }
  func.func @transform_11(%arg0: i32) -> (i32, i32) {
    %c0_i32 = arith.constant 0 : i32
    %c0_i32_0 = arith.constant 0 : i32
    %c0_i32_1 = arith.constant 0 : i32
    return %c0_i32, %c0_i32_0 : i32, i32
  }
  func.func @transform_12(%arg0: i32) -> (i32, i32) {
    %c0_i32 = arith.constant 0 : i32
    %c0_i32_0 = arith.constant 0 : i32
    %c0_i32_1 = arith.constant 0 : i32
    return %c0_i32, %c0_i32_0 : i32, i32
  }
  func.func @transform_13(%arg0: i32) -> (i32, i32) {
    %c0_i32 = arith.constant 0 : i32
    %c0_i32_0 = arith.constant 0 : i32
    %c0_i32_1 = arith.constant 0 : i32
    return %c0_i32, %c0_i32_0 : i32, i32
  }
  func.func @transform_14(%arg0: i32) -> (i32, i32) {
    %c0_i32 = arith.constant 0 : i32
    %c0_i32_0 = arith.constant 0 : i32
    %c0_i32_1 = arith.constant 0 : i32
    return %c0_i32, %c0_i32_0 : i32, i32
  }
  func.func @transform_15(%arg0: i32) -> (i32, i32) {
    %c0_i32 = arith.constant 0 : i32
    %c0_i32_0 = arith.constant 0 : i32
    %c0_i32_1 = arith.constant 0 : i32
    return %c0_i32, %c0_i32_0 : i32, i32
  }
  func.func @transform_16(%arg0: i32) -> (i32, i32) {
    %c0_i32 = arith.constant 0 : i32
    %c0_i32_0 = arith.constant 0 : i32
    return %c0_i32, %arg0 : i32, i32
  }
}

</mosaic_0001>

<bundles_post_ra>
// kernel: _fwd.1
= control target key start
LH: loop header
LB: loop body
LE: loop exit
PB: predicated region body
PF: predicated region fallthrough
CT: control target
= control target key end

     0   :  { %s1227_s0 = inlined_call_operand.vmem [shape: f32[8,11], index: 0, kind: input, shape index: {}]   ;;  %s1228_s1 = inlined_call_operand.vmem [shape: f32[8,5], index: 1, kind: input, shape index: {}]   ;;  %s1229_s2 = inlined_call_operand.vmem [shape: f32[11,32], index: 2, kind: input, shape index: {}]   ;;  %s1230_s3 = inlined_call_operand.hbm [shape: f32[5,32], index: 3, kind: input, shape index: {}]   ;;  %s1231_s4 = inlined_call_operand.hbm [shape: f32[1,32], index: 4, kind: input, shape index: {}]   ;;  %s1232_s5 = inlined_call_operand.vmem [shape: f32[32,32], index: 5, kind: input, shape index: {}]   ;;  %s1233_s6 = inlined_call_operand.hbm [shape: f32[1,32], index: 6, kind: input, shape index: {}]   ;;  %s1234_s7 = inlined_call_operand.vmem [shape: f32[32,1], index: 7, kind: input, shape index: {}]   ;;  %s1235_s8 = inlined_call_operand.<no memory space> [shape: f32[1,1], index: 8, kind: input, shape index: {}]   ;;  %s1236_s9 = inlined_call_operand.vmem [shape: f32[11,32], index: 9, kind: input, shape index: {}]   ;;  %s1237_s10 = inlined_call_operand.vmem [shape: f32[5,32], index: 10, kind: input, shape index: {}]   ;;  %s1238_s11 = inlined_call_operand.vmem [shape: f32[1,32], index: 11, kind: input, shape index: {}]   ;;  %s1239_s12 = inlined_call_operand.vmem [shape: f32[32,32], index: 12, kind: input, shape index: {}]   ;;  %s1240_s13 = inlined_call_operand.vmem [shape: f32[1,32], index: 13, kind: input, shape index: {}]   ;;  %s1241_s14 = inlined_call_operand.vmem [shape: f32[32,1], index: 14, kind: input, shape index: {}]   ;;  %s1242_s16 = inlined_call_operand.vmem [shape: f32[8,8], index: 16, kind: output, shape index: {}]   ;;  %s1243_s15 = inlined_call_operand.<no memory space> [shape: f32[1,1], index: 15, kind: input, shape index: {}]  }
   0x1   :  { %1244 = sst [smem:[#allocation11_spill]] %s1227_s0  ;;  %v21_v0 = vstv %s1235_s8  ;;  %v23_v1 = vstv %s1243_s15 }
   0x2   :  { %22 = vst [vmem:[#allocation2] sm:$0x1] %v21_v0  ;;  %24 = vst [vmem:[#allocation3] sm:$0x1] %v23_v1 }
   0x3   :  { %25 = vsyncpa [#allocation5], 0 }
   0x4   :  { %26 = vsyncpa [#allocation7], 0  ;;  %s993_s25 = smov [#allocation6]   ;;  %s994_s27 = smov [#allocation4]  }
   0x5   :  { %s49_s26 = sshll.u32 %s993_s25, 4  ;;  %s39_s28 = sshll.u32 %s994_s27, 4  ;;  %s50_s26 = int_to_ptr.vmem [resolvable:$true] %s49_s26  ;;  %s40_s28 = int_to_ptr.vmem [resolvable:$true] %s39_s28 }
   0x6   :  { %s937_s29 = scalar_lea.vmem %s50_s26, 16  ;;  %s941_s30 = scalar_lea.vmem %s50_s26, 32 }
   0x7   :  { %p938_p0 = scmp.ne.s32.totalorder %s50_s26, %s937_s29  ;;  %p942_p1 = scmp.lt.s32.totalorder %s50_s26, %s50_s26 }
   0x8   :  { %p943_p2 = scmp.lt.s32.totalorder %s941_s30, %s937_s29 }
   0xa   :  { %p944_p3 = por %p943_p2, %p942_p1 }
   0xc   :  { %p945_p4 = pnand %p944_p3, %p938_p0 }
   0xe   :  { %948 = shalt.err (!%p945_p4)
}
   0xf   :  { %52 = dma.hbm_to_vmem [thread:$0]  %s1231_s4, 16, %s50_s26, [#allocation7]  }
  0x10   :  { %s957_s0 = scalar_lea.vmem %s40_s28, 128  ;;  %p962_p6 = scmp.lt.s32.totalorder %s40_s28, %s40_s28 }
  0x11   :  { %p958_p5 = scmp.ne.s32.totalorder %s40_s28, %s957_s0  ;;  %p963_p7 = scmp.lt.s32.totalorder %s957_s0, %s957_s0 }
  0x13   :  { %p964_p8 = por %p963_p7, %p962_p6 }
  0x15   :  { %p965_p9 = pnand %p964_p8, %p958_p5 }
  0x17   :  { %968 = shalt.err (!%p965_p9)
}
  0x18   :  { %42 = dma.hbm_to_vmem [thread:$0]  %s1230_s3, 128, %s40_s28, [#allocation5]  }
  0x19   :  { %s995_s19 = smov [#allocation8]  }
  0x1a   :  { %s61_s20 = sshll.u32 %s995_s19, 4  ;;  %s62_s20 = int_to_ptr.vmem [resolvable:$true] %s61_s20 }
  0x1b   :  { %s977_s21 = scalar_lea.vmem %s62_s20, 16  ;;  %s981_s22 = scalar_lea.vmem %s62_s20, 32 }
  0x1c   :  { %p978_p10 = scmp.ne.s32.totalorder %s62_s20, %s977_s21  ;;  %p982_p11 = scmp.lt.s32.totalorder %s62_s20, %s62_s20 }
  0x1d   :  { %p983_p12 = scmp.lt.s32.totalorder %s981_s22, %s977_s21 }
  0x1f   :  { %p984_p13 = por %p983_p12, %p982_p11 }
  0x21   :  { %p985_p0 = pnand %p984_p13, %p978_p10 }
  0x23   :  { %988 = shalt.err (!%p985_p0)
}
  0x24   :  { %64 = dma.hbm_to_vmem [thread:$0]  %s1233_s6, 16, %s62_s20, [#allocation7]  }
  0x25   :  { %989 = dma.done.wait [#allocation5], 128  }
  0x26   :  { %990 = vsyncadd [#allocation5], 4294967168 }
  0x27   :  { %991 = dma.done.wait [#allocation7], 32  }
  0x28   :  { %992 = vsyncadd [#allocation7], 4294967264  ;;  %v996_v2 = vmov 0.0   ;;  %vm997_vm0 = vmmov 0   ;;  %vm101_vm1 = vcmask 1044480   ;;  %vm179_vm2 = vcmask 1042432  }
  0x29   :  { %855 = vmatprep.subr.mxu0 %v996_v2  ;;  %860 = vmatprep.subr.mxu1 %v996_v2  ;;  %vm97_vm3 = vcmask 39936   ;;  %v96_v3 = vld [vmem:[#allocation4] sm:$0x1f]  ;;  %v95_v4 = vld [vmem:[%s1229_s2 + $0x8] sm:$0x7]  ;;  %s1245_s30 = sld [smem:[#allocation11_spill]] }
  0x2a   :  { %857 = vmatprep.mubr.msk.f32.mxu0 %vm997_vm0, %v996_v2  ;;  %864 = vmatprep.mubr.msk.f32.mxu1 %vm997_vm0, %v996_v2  ;;  %v93_v5 = vld [vmem:[%s1228_s1] sm:$0xff]  ;;  %vm175_vm4 = vcmask 89088   ;;  %v265_v8 = vld [vmem:[%s1232_s5 + $0x18] sm:$0xff]  ;;  %v264_v9 = vld [vmem:[%s1232_s5 + $0x10] sm:$0xff]  ;;  %vm273_vm5 = vcmask 261120   ;;  %s998_s3 = smov 1  }
  0x2b   :  { %856 = vmatpush3.msk.msra.mxu0 %vm101_vm1, %v96_v3  ;;  %861 = vmatpush3.msk.msra.mxu1 %vm179_vm2, %v95_v4  ;;  %v94_v6 = vld [vmem:[%s1229_s2] sm:$0xff]  ;;  %v263_v10 = vld [vmem:[%s1232_s5 + $0x8] sm:$0xff]  ;;  %v351_v12 = vld [vmem:[%s1234_s7 + $0x18] sm:$0xff]  ;;  %vm763_vm6 = vcmask 7168   ;;  %vm765_vm7 = vcmask 15360   ;;  %vm799_vm8 = vcmask 64512  }
  0x2c   :  { %858 = vmatmul.mubr.msk.f32.vlgmr.msra.gmra.mxu0 %vm97_vm3, %v93_v5  ;;  %862 = vmatprep.subr.mxu1 %v996_v2  ;;  %v262_v11 = vld [vmem:[%s1232_s5] sm:$0xff]  ;;  %v350_v13 = vld [vmem:[%s1234_s7 + $0x10] sm:$0xff]  ;;  %v811_v17 = vld [vmem:[#allocation6] ss:$0 sm:$0xff] }
  0x2d   :  { %863 = vmatpush3.msra.mxu1 %v94_v6  ;;  %867 = vmatprep.subr.mxu0 %v996_v2  ;;  %v349_v22 = vld [vmem:[%s1234_s7 + $0x8] sm:$0xff]  ;;  %v348_v23 = vld [vmem:[%s1234_s7] sm:$0xff]  ;;  %v593_v33 = vld [vmem:[%s1239_s12 + $0x18] sm:$0xff] }
  0x2e   :  { %875 = vmatprep.mubr.msk.f32.mxu0 %vm997_vm0, %v996_v2  ;;  %878 = vmatprep.subr.mxu1 %v996_v2  ;;  %v434_v24 = vld [vmem:[%s1237_s10] sm:$0x1f]  ;;  %v812_v25 = vld [vmem:[#allocation8] ss:$0 sm:$0xff]  ;;  %v433_v30 = vld [vmem:[%s1236_s9 + $0x8] sm:$0x7] }
  0x2f   :  { %v92_v7 = vld [vmem:[%s1245_s30] sm:$0xff]  ;;  %868 = vmatpush3.msra.mxu0 %v265_v8  ;;  %v592_v35 = vld [vmem:[%s1239_s12 + $0x10] sm:$0xff]  ;;  %v591_v36 = vld [vmem:[%s1239_s12 + $0x8] sm:$0xff] }
  0x30   :  { %865 = vmatmul.mubr.msk.f32.vlgmr.msra.gmra.mxu1 %vm175_vm4, %v92_v7  ;;  %869 = vmatprep.subr.mxu0 %v996_v2  ;;  %v432_v31 = vld [vmem:[%s1236_s9] sm:$0xff]  ;;  %v678_v38 = vld [vmem:[%s1241_s14 + $0x18] sm:$0xff]  ;;  %v677_v47 = vld [vmem:[%s1241_s14 + $0x10] sm:$0xff] }
  0x31   :  { %886 = vmatprep.mubr.msk.f32.mxu1 %vm997_vm0, %v996_v2  ;;  %870 = vmatpush3.msra.mxu0 %v264_v9  ;;  %v590_v37 = vld [vmem:[%s1239_s12] sm:$0xff]  ;;  %v676_v48 = vld [vmem:[%s1241_s14 + $0x8] sm:$0xff] }
  0x32   :  { %871 = vmatprep.subr.mxu0 %v996_v2  ;;  %879 = vmatpush3.msra.mxu1 %v351_v12  ;;  %v820_v42 = vld [vmem:[%s1238_s11] ss:$0 sm:$0xff]  ;;  %v823_v55 = vld [vmem:[#allocation3] ss:$0 sm:$0xff] }
  0x33   :  { %872 = vmatpush3.msra.mxu0 %v263_v10  ;;  %880 = vmatprep.subr.mxu1 %v996_v2  ;;  %v675_v49 = vld [vmem:[%s1241_s14] sm:$0xff] }
  0x34   :  { %873 = vmatprep.subr.mxu0 %v996_v2  ;;  %881 = vmatpush3.msra.mxu1 %v350_v13  ;;  %v821_v50 = vld [vmem:[%s1240_s13] ss:$0 sm:$0xff] }
  0x35   :  { %874 = vmatpush3.msra.mxu0 %v262_v11  ;;  %882 = vmatprep.subr.mxu1 %v996_v2  ;;  %v814_v59 = vld [vmem:[#allocation2] ss:$0 sm:$0xff] }
  0x36   :  { %889 = vmatprep.subr.mxu0 %v996_v2  ;;  %883 = vmatpush3.msra.mxu1 %v349_v22 }
  0x37   :  { %884 = vmatprep.subr.mxu1 %v996_v2 }
  0x38   :  { %885 = vmatpush3.msra.mxu1 %v348_v23 }
  0x39   :  { %894 = vmatprep.subr.mxu1 %v996_v2 }
  0xec   :  { %v171_v14 = vpop.f32.mrf.mxu0 }
  0xee   :  { %v859_v15 = vpop.f32.mrf.mxu0 }
  0xf0   :  { %v249_v16 = vpop.f32.mrf.mxu1 }
  0xf1   :  { %v250_v18 = vadd.f32 %v249_v16, %v171_v14 }
  0xf2   :  { %v866_v19 = vpop.f32.mrf.mxu1 }
  0xf3   :  { %v260_v20 = vadd.f32 %v811_v17, %v250_v18 }
  0xf5   :  { %v261_v21 = vmax.f32 %v260_v20, 0.0 }
  0xf7   :  { %876 = vmatmul.mubr.msk.f32.vlgmr.msra.gmra.mxu0 %vm273_vm5, %v261_v21 }
  0xf8   :  { %891 = vmatprep.mubr.msk.f32.mxu0 %vm997_vm0, %v996_v2  ;;  %890 = vmatpush3.msk.msra.mxu0 %vm101_vm1, %v434_v24 }
  0xf9   :  { %901 = vmatprep.subr.mxu0 %v996_v2 }
  0xfb   :  { %892 = vmatmul.mubr.msk.f32.vlgmr.msra.gmra.mxu0 %vm97_vm3, %v93_v5 }
  0xfc   :  { %909 = vmatprep.mubr.msk.f32.mxu0 %vm997_vm0, %v996_v2  ;;  %902 = vmatpush3.msra.mxu0 %v593_v33 }
  0xfd   :  { %903 = vmatprep.subr.mxu0 %v996_v2 }
  0xfe   :  { %904 = vmatpush3.msra.mxu0 %v592_v35 }
  0xff   :  { %905 = vmatprep.subr.mxu0 %v996_v2 }
 0x100   :  { %906 = vmatpush3.msra.mxu0 %v591_v36 }
 0x101   :  { %907 = vmatprep.subr.mxu0 %v996_v2 }
 0x102   :  { %908 = vmatpush3.msra.mxu0 %v590_v37 }
 0x1b7   :  { %v343_v26 = vpop.f32.mrf.mxu0 }
 0x1b8   :  { %v344_v27 = vadd.f32 %v812_v25, %v343_v26 }
 0x1b9   :  { %v877_v28 = vpop.f32.mrf.mxu0 }
 0x1ba   :  { %v347_v29 = vmax.f32 %v344_v27, 0.0 }
 0x1bb   :  { %v504_v32 = vpop.f32.mrf.mxu0 }
 0x1bc   :  { %887 = vmatmul.mubr.msk.f32.vlgmr.msra.gmra.mxu1 %vm273_vm5, %v347_v29 }
 0x1bd   :  { %895 = vmatpush3.msk.msra.mxu1 %vm179_vm2, %v433_v30  ;;  %898 = vmatprep.mubr.msk.f32.mxu1 %vm997_vm0, %v996_v2  ;;  %v893_v34 = vpop.f32.mrf.mxu0 }
 0x1be   :  { %896 = vmatprep.subr.mxu1 %v996_v2 }
 0x1bf   :  { %897 = vmatpush3.msra.mxu1 %v432_v31 }
 0x1c0   :  { %899 = vmatmul.mubr.msk.f32.vlgmr.msra.gmra.mxu1 %vm175_vm4, %v92_v7  ;;  %912 = vmatprep.subr.mxu1 %v996_v2 }
 0x1c1   :  { %920 = vmatprep.mubr.msk.f32.mxu1 %vm997_vm0, %v996_v2  ;;  %913 = vmatpush3.msra.mxu1 %v678_v38 }
 0x1c2   :  { %914 = vmatprep.subr.mxu1 %v996_v2 }
 0x1c3   :  { %915 = vmatpush3.msra.mxu1 %v677_v47 }
 0x1c4   :  { %916 = vmatprep.subr.mxu1 %v996_v2 }
 0x1c5   :  { %917 = vmatpush3.msra.mxu1 %v676_v48 }
 0x1c6   :  { %918 = vmatprep.subr.mxu1 %v996_v2 }
 0x1c7   :  { %919 = vmatpush3.msra.mxu1 %v675_v49 }
 0x27c   :  { %v428_v39 = vpop.f32.mrf.mxu1 }
 0x27d   :  { %v429_v60 = vadd.f32 %v814_v59, %v428_v39 }
 0x27e   :  { %v888_v40 = vpop.f32.mrf.mxu1 }
 0x280   :  { %v577_v41 = vpop.f32.mrf.mxu1 }
 0x281   :  { %v578_v43 = vadd.f32 %v577_v41, %v504_v32 }
 0x282   :  { %v900_v44 = vpop.f32.mrf.mxu1 }
 0x283   :  { %v588_v45 = vadd.f32 %v820_v42, %v578_v43 }
 0x285   :  { %v589_v46 = vmax.f32 %v588_v45, 0.0 }
 0x287   :  { %910 = vmatmul.mubr.msk.f32.vlgmr.msra.gmra.mxu0 %vm273_vm5, %v589_v46 }
 0x347   :  { %v670_v51 = vpop.f32.mrf.mxu0 }
 0x348   :  { %v671_v52 = vadd.f32 %v821_v50, %v670_v51 }
 0x349   :  { %v911_v53 = vpop.f32.mrf.mxu0 }
 0x34a   :  { %v674_v54 = vmax.f32 %v671_v52, 0.0 }
 0x34c   :  { %921 = vmatmul.mubr.msk.f32.vlgmr.msra.gmra.mxu1 %vm273_vm5, %v674_v54 }
 0x40c   :  { %v755_v56 = vpop.f32.mrf.mxu1 }
 0x40d   :  { %v756_v57 = vadd.f32 %v823_v55, %v755_v56 }
 0x40e   :  { %v922_v58 = vpop.f32.mrf.mxu1 }
 0x40f   :  { %760 = vrot.lane.b32.xlu0 %v756_v57, %s998_s3 }
 0x481   :  { %v761_v61 = vpop.permute.xlu0 %760 }
 0x482   :  { %v764_v62 = vsel %vm763_vm6, %v429_v60, %v761_v61 }
 0x483   :  { %v766_v63 = vsel %vm765_vm7, %v764_v62, 0.0 }
 0x484   :  { %767 = vxpose.xlu0.b32.start.end [1/1] (short) (narrow) %v766_v63, 8 }
 0x500   :  { %v783_v0 = vpop.trf.xlu0 }
 0x501   :  { %800 = vst.msk [vmem:[%s1242_s16] sm:$0xff] %vm799_vm8, %v783_v0 }
 0x502   :  { %805 = vsyncpa [#allocation5], 1 }
 0x503   :  { %806 = vsyncpa [#allocation7], 1 }

// kernel: _fwd.1
= control target key start
LH: loop header
LB: loop body
LE: loop exit
PB: predicated region body
PF: predicated region fallthrough
CT: control target
= control target key end

     0   :  { %s1227_s0 = inlined_call_operand.vmem [shape: f32[8,11], index: 0, kind: input, shape index: {}]   ;;  %s1228_s1 = inlined_call_operand.vmem [shape: f32[8,5], index: 1, kind: input, shape index: {}]   ;;  %s1229_s2 = inlined_call_operand.vmem [shape: f32[11,32], index: 2, kind: input, shape index: {}]   ;;  %s1230_s3 = inlined_call_operand.hbm [shape: f32[5,32], index: 3, kind: input, shape index: {}]   ;;  %s1231_s4 = inlined_call_operand.hbm [shape: f32[1,32], index: 4, kind: input, shape index: {}]   ;;  %s1232_s5 = inlined_call_operand.vmem [shape: f32[32,32], index: 5, kind: input, shape index: {}]   ;;  %s1233_s6 = inlined_call_operand.hbm [shape: f32[1,32], index: 6, kind: input, shape index: {}]   ;;  %s1234_s7 = inlined_call_operand.vmem [shape: f32[32,1], index: 7, kind: input, shape index: {}]   ;;  %s1235_s8 = inlined_call_operand.<no memory space> [shape: f32[1,1], index: 8, kind: input, shape index: {}]   ;;  %s1236_s9 = inlined_call_operand.vmem [shape: f32[11,32], index: 9, kind: input, shape index: {}]   ;;  %s1237_s10 = inlined_call_operand.vmem [shape: f32[5,32], index: 10, kind: input, shape index: {}]   ;;  %s1238_s11 = inlined_call_operand.vmem [shape: f32[1,32], index: 11, kind: input, shape index: {}]   ;;  %s1239_s12 = inlined_call_operand.vmem [shape: f32[32,32], index: 12, kind: input, shape index: {}]   ;;  %s1240_s13 = inlined_call_operand.vmem [shape: f32[1,32], index: 13, kind: input, shape index: {}]   ;;  %s1241_s14 = inlined_call_operand.vmem [shape: f32[32,1], index: 14, kind: input, shape index: {}]   ;;  %s1242_s16 = inlined_call_operand.vmem [shape: f32[8,8], index: 16, kind: output, shape index: {}]   ;;  %s1243_s15 = inlined_call_operand.<no memory space> [shape: f32[1,1], index: 15, kind: input, shape index: {}]  }
   0x1   :  { %1244 = sst [smem:[#allocation11_spill]] %s1227_s0  ;;  %v21_v0 = vstv %s1235_s8  ;;  %v23_v1 = vstv %s1243_s15 }
   0x2   :  { %22 = vst [vmem:[#allocation2] sm:$0x1] %v21_v0  ;;  %24 = vst [vmem:[#allocation3] sm:$0x1] %v23_v1 }
   0x3   :  { %25 = vsyncpa [#allocation5], 0 }
   0x4   :  { %26 = vsyncpa [#allocation7], 0  ;;  %s993_s25 = smov [#allocation6]   ;;  %s994_s27 = smov [#allocation4]  }
   0x5   :  { %s49_s26 = sshll.u32 %s993_s25, 4  ;;  %s39_s28 = sshll.u32 %s994_s27, 4  ;;  %s50_s26 = int_to_ptr.vmem [resolvable:$true] %s49_s26  ;;  %s40_s28 = int_to_ptr.vmem [resolvable:$true] %s39_s28 }
   0x6   :  { %s937_s29 = scalar_lea.vmem %s50_s26, 16  ;;  %s941_s30 = scalar_lea.vmem %s50_s26, 32 }
   0x7   :  { %p938_p0 = scmp.ne.s32.totalorder %s50_s26, %s937_s29  ;;  %p942_p1 = scmp.lt.s32.totalorder %s50_s26, %s50_s26 }
   0x8   :  { %p943_p2 = scmp.lt.s32.totalorder %s941_s30, %s937_s29 }
   0xa   :  { %p944_p3 = por %p943_p2, %p942_p1 }
   0xc   :  { %p945_p4 = pnand %p944_p3, %p938_p0 }
   0xe   :  { %948 = shalt.err (!%p945_p4)
}
   0xf   :  { %52 = dma.hbm_to_vmem [thread:$0]  %s1231_s4, 16, %s50_s26, [#allocation7]  }
  0x10   :  { %s957_s0 = scalar_lea.vmem %s40_s28, 128  ;;  %p962_p6 = scmp.lt.s32.totalorder %s40_s28, %s40_s28 }
  0x11   :  { %p958_p5 = scmp.ne.s32.totalorder %s40_s28, %s957_s0  ;;  %p963_p7 = scmp.lt.s32.totalorder %s957_s0, %s957_s0 }
  0x13   :  { %p964_p8 = por %p963_p7, %p962_p6 }
  0x15   :  { %p965_p9 = pnand %p964_p8, %p958_p5 }
  0x17   :  { %968 = shalt.err (!%p965_p9)
}
  0x18   :  { %42 = dma.hbm_to_vmem [thread:$0]  %s1230_s3, 128, %s40_s28, [#allocation5]  }
  0x19   :  { %s995_s19 = smov [#allocation8]  }
  0x1a   :  { %s61_s20 = sshll.u32 %s995_s19, 4  ;;  %s62_s20 = int_to_ptr.vmem [resolvable:$true] %s61_s20 }
  0x1b   :  { %s977_s21 = scalar_lea.vmem %s62_s20, 16  ;;  %s981_s22 = scalar_lea.vmem %s62_s20, 32 }
  0x1c   :  { %p978_p10 = scmp.ne.s32.totalorder %s62_s20, %s977_s21  ;;  %p982_p11 = scmp.lt.s32.totalorder %s62_s20, %s62_s20 }
  0x1d   :  { %p983_p12 = scmp.lt.s32.totalorder %s981_s22, %s977_s21 }
  0x1f   :  { %p984_p13 = por %p983_p12, %p982_p11 }
  0x21   :  { %p985_p0 = pnand %p984_p13, %p978_p10 }
  0x23   :  { %988 = shalt.err (!%p985_p0)
}
  0x24   :  { %64 = dma.hbm_to_vmem [thread:$0]  %s1233_s6, 16, %s62_s20, [#allocation7]  }
  0x25   :  { %989 = dma.done.wait [#allocation5], 128  }
  0x26   :  { %990 = vsyncadd [#allocation5], 4294967168 }
  0x27   :  { %991 = dma.done.wait [#allocation7], 32  }
  0x28   :  { %992 = vsyncadd [#allocation7], 4294967264  ;;  %v996_v2 = vmov 0.0   ;;  %vm997_vm0 = vmmov 0   ;;  %vm101_vm1 = vcmask 1044480   ;;  %vm179_vm2 = vcmask 1042432  }
  0x29   :  { %855 = vmatprep.subr.mxu0 %v996_v2  ;;  %860 = vmatprep.subr.mxu1 %v996_v2  ;;  %vm97_vm3 = vcmask 39936   ;;  %v96_v3 = vld [vmem:[#allocation4] sm:$0x1f]  ;;  %v95_v4 = vld [vmem:[%s1229_s2 + $0x8] sm:$0x7]  ;;  %s1245_s30 = sld [smem:[#allocation11_spill]] }
  0x2a   :  { %857 = vmatprep.mubr.msk.f32.mxu0 %vm997_vm0, %v996_v2  ;;  %864 = vmatprep.mubr.msk.f32.mxu1 %vm997_vm0, %v996_v2  ;;  %v93_v5 = vld [vmem:[%s1228_s1] sm:$0xff]  ;;  %vm175_vm4 = vcmask 89088   ;;  %v265_v8 = vld [vmem:[%s1232_s5 + $0x18] sm:$0xff]  ;;  %v264_v9 = vld [vmem:[%s1232_s5 + $0x10] sm:$0xff]  ;;  %vm273_vm5 = vcmask 261120   ;;  %s998_s3 = smov 1  }
  0x2b   :  { %856 = vmatpush3.msk.msra.mxu0 %vm101_vm1, %v96_v3  ;;  %861 = vmatpush3.msk.msra.mxu1 %vm179_vm2, %v95_v4  ;;  %v94_v6 = vld [vmem:[%s1229_s2] sm:$0xff]  ;;  %v263_v10 = vld [vmem:[%s1232_s5 + $0x8] sm:$0xff]  ;;  %v351_v12 = vld [vmem:[%s1234_s7 + $0x18] sm:$0xff]  ;;  %vm763_vm6 = vcmask 7168   ;;  %vm765_vm7 = vcmask 15360   ;;  %vm799_vm8 = vcmask 64512  }
  0x2c   :  { %858 = vmatmul.mubr.msk.f32.vlgmr.msra.gmra.mxu0 %vm97_vm3, %v93_v5  ;;  %862 = vmatprep.subr.mxu1 %v996_v2  ;;  %v262_v11 = vld [vmem:[%s1232_s5] sm:$0xff]  ;;  %v350_v13 = vld [vmem:[%s1234_s7 + $0x10] sm:$0xff]  ;;  %v811_v17 = vld [vmem:[#allocation6] ss:$0 sm:$0xff] }
  0x2d   :  { %863 = vmatpush3.msra.mxu1 %v94_v6  ;;  %867 = vmatprep.subr.mxu0 %v996_v2  ;;  %v349_v22 = vld [vmem:[%s1234_s7 + $0x8] sm:$0xff]  ;;  %v348_v23 = vld [vmem:[%s1234_s7] sm:$0xff]  ;;  %v593_v33 = vld [vmem:[%s1239_s12 + $0x18] sm:$0xff] }
  0x2e   :  { %875 = vmatprep.mubr.msk.f32.mxu0 %vm997_vm0, %v996_v2  ;;  %878 = vmatprep.subr.mxu1 %v996_v2  ;;  %v434_v24 = vld [vmem:[%s1237_s10] sm:$0x1f]  ;;  %v812_v25 = vld [vmem:[#allocation8] ss:$0 sm:$0xff]  ;;  %v433_v30 = vld [vmem:[%s1236_s9 + $0x8] sm:$0x7] }
  0x2f   :  { %v92_v7 = vld [vmem:[%s1245_s30] sm:$0xff]  ;;  %868 = vmatpush3.msra.mxu0 %v265_v8  ;;  %v592_v35 = vld [vmem:[%s1239_s12 + $0x10] sm:$0xff]  ;;  %v591_v36 = vld [vmem:[%s1239_s12 + $0x8] sm:$0xff] }
  0x30   :  { %865 = vmatmul.mubr.msk.f32.vlgmr.msra.gmra.mxu1 %vm175_vm4, %v92_v7  ;;  %869 = vmatprep.subr.mxu0 %v996_v2  ;;  %v432_v31 = vld [vmem:[%s1236_s9] sm:$0xff]  ;;  %v678_v38 = vld [vmem:[%s1241_s14 + $0x18] sm:$0xff]  ;;  %v677_v47 = vld [vmem:[%s1241_s14 + $0x10] sm:$0xff] }
  0x31   :  { %886 = vmatprep.mubr.msk.f32.mxu1 %vm997_vm0, %v996_v2  ;;  %870 = vmatpush3.msra.mxu0 %v264_v9  ;;  %v590_v37 = vld [vmem:[%s1239_s12] sm:$0xff]  ;;  %v676_v48 = vld [vmem:[%s1241_s14 + $0x8] sm:$0xff] }
  0x32   :  { %871 = vmatprep.subr.mxu0 %v996_v2  ;;  %879 = vmatpush3.msra.mxu1 %v351_v12  ;;  %v820_v42 = vld [vmem:[%s1238_s11] ss:$0 sm:$0xff]  ;;  %v823_v55 = vld [vmem:[#allocation3] ss:$0 sm:$0xff] }
  0x33   :  { %872 = vmatpush3.msra.mxu0 %v263_v10  ;;  %880 = vmatprep.subr.mxu1 %v996_v2  ;;  %v675_v49 = vld [vmem:[%s1241_s14] sm:$0xff] }
  0x34   :  { %873 = vmatprep.subr.mxu0 %v996_v2  ;;  %881 = vmatpush3.msra.mxu1 %v350_v13  ;;  %v821_v50 = vld [vmem:[%s1240_s13] ss:$0 sm:$0xff] }
  0x35   :  { %874 = vmatpush3.msra.mxu0 %v262_v11  ;;  %882 = vmatprep.subr.mxu1 %v996_v2  ;;  %v814_v59 = vld [vmem:[#allocation2] ss:$0 sm:$0xff] }
  0x36   :  { %889 = vmatprep.subr.mxu0 %v996_v2  ;;  %883 = vmatpush3.msra.mxu1 %v349_v22 }
  0x37   :  { %884 = vmatprep.subr.mxu1 %v996_v2 }
  0x38   :  { %885 = vmatpush3.msra.mxu1 %v348_v23 }
  0x39   :  { %894 = vmatprep.subr.mxu1 %v996_v2 }
  0xec   :  { %v171_v14 = vpop.f32.mrf.mxu0 }
  0xee   :  { %v859_v15 = vpop.f32.mrf.mxu0 }
  0xf0   :  { %v249_v16 = vpop.f32.mrf.mxu1 }
  0xf1   :  { %v250_v18 = vadd.f32 %v249_v16, %v171_v14 }
  0xf2   :  { %v866_v19 = vpop.f32.mrf.mxu1 }
  0xf3   :  { %v260_v20 = vadd.f32 %v811_v17, %v250_v18 }
  0xf5   :  { %v261_v21 = vmax.f32 %v260_v20, 0.0 }
  0xf7   :  { %876 = vmatmul.mubr.msk.f32.vlgmr.msra.gmra.mxu0 %vm273_vm5, %v261_v21 }
  0xf8   :  { %891 = vmatprep.mubr.msk.f32.mxu0 %vm997_vm0, %v996_v2  ;;  %890 = vmatpush3.msk.msra.mxu0 %vm101_vm1, %v434_v24 }
  0xf9   :  { %901 = vmatprep.subr.mxu0 %v996_v2 }
  0xfb   :  { %892 = vmatmul.mubr.msk.f32.vlgmr.msra.gmra.mxu0 %vm97_vm3, %v93_v5 }
  0xfc   :  { %909 = vmatprep.mubr.msk.f32.mxu0 %vm997_vm0, %v996_v2  ;;  %902 = vmatpush3.msra.mxu0 %v593_v33 }
  0xfd   :  { %903 = vmatprep.subr.mxu0 %v996_v2 }
  0xfe   :  { %904 = vmatpush3.msra.mxu0 %v592_v35 }
  0xff   :  { %905 = vmatprep.subr.mxu0 %v996_v2 }
 0x100   :  { %906 = vmatpush3.msra.mxu0 %v591_v36 }
 0x101   :  { %907 = vmatprep.subr.mxu0 %v996_v2 }
 0x102   :  { %908 = vmatpush3.msra.mxu0 %v590_v37 }
 0x1b7   :  { %v343_v26 = vpop.f32.mrf.mxu0 }
 0x1b8   :  { %v344_v27 = vadd.f32 %v812_v25, %v343_v26 }
 0x1b9   :  { %v877_v28 = vpop.f32.mrf.mxu0 }
 0x1ba   :  { %v347_v29 = vmax.f32 %v344_v27, 0.0 }
 0x1bb   :  { %v504_v32 = vpop.f32.mrf.mxu0 }
 0x1bc   :  { %887 = vmatmul.mubr.msk.f32.vlgmr.msra.gmra.mxu1 %vm273_vm5, %v347_v29 }
 0x1bd   :  { %895 = vmatpush3.msk.msra.mxu1 %vm179_vm2, %v433_v30  ;;  %898 = vmatprep.mubr.msk.f32.mxu1 %vm997_vm0, %v996_v2  ;;  %v893_v34 = vpop.f32.mrf.mxu0 }
 0x1be   :  { %896 = vmatprep.subr.mxu1 %v996_v2 }
 0x1bf   :  { %897 = vmatpush3.msra.mxu1 %v432_v31 }
 0x1c0   :  { %899 = vmatmul.mubr.msk.f32.vlgmr.msra.gmra.mxu1 %vm175_vm4, %v92_v7  ;;  %912 = vmatprep.subr.mxu1 %v996_v2 }
 0x1c1   :  { %920 = vmatprep.mubr.msk.f32.mxu1 %vm997_vm0, %v996_v2  ;;  %913 = vmatpush3.msra.mxu1 %v678_v38 }
 0x1c2   :  { %914 = vmatprep.subr.mxu1 %v996_v2 }
 0x1c3   :  { %915 = vmatpush3.msra.mxu1 %v677_v47 }
 0x1c4   :  { %916 = vmatprep.subr.mxu1 %v996_v2 }
 0x1c5   :  { %917 = vmatpush3.msra.mxu1 %v676_v48 }
 0x1c6   :  { %918 = vmatprep.subr.mxu1 %v996_v2 }
 0x1c7   :  { %919 = vmatpush3.msra.mxu1 %v675_v49 }
 0x27c   :  { %v428_v39 = vpop.f32.mrf.mxu1 }
 0x27d   :  { %v429_v60 = vadd.f32 %v814_v59, %v428_v39 }
 0x27e   :  { %v888_v40 = vpop.f32.mrf.mxu1 }
 0x280   :  { %v577_v41 = vpop.f32.mrf.mxu1 }
 0x281   :  { %v578_v43 = vadd.f32 %v577_v41, %v504_v32 }
 0x282   :  { %v900_v44 = vpop.f32.mrf.mxu1 }
 0x283   :  { %v588_v45 = vadd.f32 %v820_v42, %v578_v43 }
 0x285   :  { %v589_v46 = vmax.f32 %v588_v45, 0.0 }
 0x287   :  { %910 = vmatmul.mubr.msk.f32.vlgmr.msra.gmra.mxu0 %vm273_vm5, %v589_v46 }
 0x347   :  { %v670_v51 = vpop.f32.mrf.mxu0 }
 0x348   :  { %v671_v52 = vadd.f32 %v821_v50, %v670_v51 }
 0x349   :  { %v911_v53 = vpop.f32.mrf.mxu0 }
 0x34a   :  { %v674_v54 = vmax.f32 %v671_v52, 0.0 }
 0x34c   :  { %921 = vmatmul.mubr.msk.f32.vlgmr.msra.gmra.mxu1 %vm273_vm5, %v674_v54 }
 0x40c   :  { %v755_v56 = vpop.f32.mrf.mxu1 }
 0x40d   :  { %v756_v57 = vadd.f32 %v823_v55, %v755_v56 }
 0x40e   :  { %v922_v58 = vpop.f32.mrf.mxu1 }
 0x40f   :  { %760 = vrot.lane.b32.xlu0 %v756_v57, %s998_s3 }
 0x481   :  { %v761_v61 = vpop.permute.xlu0 %760 }
 0x482   :  { %v764_v62 = vsel %vm763_vm6, %v429_v60, %v761_v61 }
 0x483   :  { %v766_v63 = vsel %vm765_vm7, %v764_v62, 0.0 }
 0x484   :  { %767 = vxpose.xlu0.b32.start.end [1/1] (short) (narrow) %v766_v63, 8 }
 0x500   :  { %v783_v0 = vpop.trf.xlu0 }
 0x501   :  { %800 = vst.msk [vmem:[%s1242_s16] sm:$0xff] %vm799_vm8, %v783_v0 }
 0x502   :  { %805 = vsyncpa [#allocation5], 1 }
 0x503   :  { %806 = vsyncpa [#allocation7], 1 }

</bundles_post_ra>
